<compile_context>
chip_gen: v7x
topology: tpu7x:2x2x1
jax: 0.10.0
libtpu: 0.0.40
codegen_flags: <defaults>
</compile_context>

<pallas_src>
import math
import functools

import jax
import jax.numpy as jnp
from jax.experimental import pallas as pl
from jax.experimental.pallas import tpu as pltpu

_EPS = 1e-6
_INV_SQRT2 = 1.0 / math.sqrt(2.0)
_MXU_DTYPE = jnp.bfloat16          # MXU operand dtype (full-rate on v5e/v6e/v7x)


def _vmem_limit_bytes():
    # ~3/4 of physical VMEM, capped at 96 MiB (=> 96 MiB on v5e/v6e, 48 MiB on v7x).
    try:
        cap = int(getattr(pltpu.get_tpu_info(), "vmem_capacity_bytes"))
        return int(min(cap * 3 // 4, 96 << 20))
    except Exception:
        return 48 << 20


# grid = (batch, L-tile): both axes independent -> megacore-friendly.
_CPARAMS = pltpu.CompilerParams(
    dimension_semantics=("parallel", "parallel"),
    vmem_limit_bytes=_vmem_limit_bytes(),
)


# ------------------------------- in-kernel helpers ------------------------------


def _ln(v, w, b, eps):
    """LayerNorm over the last axis (f32 math)."""
    f32 = jnp.float32
    u = jnp.mean(v, axis=-1, keepdims=True)
    var = jnp.mean(jnp.square(v - u), axis=-1, keepdims=True)
    return (v - u) * jax.lax.rsqrt(var + eps) * w.astype(f32) + b.astype(f32)


# ------------------------------- Pallas kernels -------------------------------


def block_kernel(*refs, K, eps, mxu_dtype, fuse_ds, fuse_final_ln,
                 mask_tail, l_valid, base):
    """One fused EncoderBlock on a (TL, C) channels-last tile.

    [optional fused mid-downsample: channels_first LN + 1x1 conv, applied to the tile
    AND its halo rows]  ->  depthwise conv (K sublane-shifted taps from aligned VMEM
    scratch)  ->  LayerNorm  ->  Linear  ->  exact GELU  ->  Linear  ->  gamma scale
    ->  residual  ->  [optional fused final channels_first LN].
    """
    f32 = jnp.float32
    it = iter(refs)
    lh_ref = next(it); cur_ref = next(it); rh_ref = next(it)
    if fuse_ds:
        dslnw_ref, dslnb_ref = next(it), next(it)
        dsw_ref, dsb_ref = next(it), next(it)
    dww_ref, dwb_ref = next(it), next(it)
    lnw_ref, lnb_ref = next(it), next(it)
    w1_ref, b1_ref = next(it), next(it)
    w2_ref, b2_ref = next(it), next(it)
    gm_ref = next(it)
    if fuse_final_ln:
        flnw_ref, flnb_ref = next(it), next(it)
    o_ref = next(it)
    xs_ref = next(it)

    pad = (K - 1) // 2
    TL = cur_ref.shape[1]
    C = o_ref.shape[2]
    j = pl.program_id(1)
    nj = pl.num_programs(1)

    if mask_tail:
        valid = (j * TL + jax.lax.broadcasted_iota(jnp.int32, (TL, 1), 0)
                 < l_valid).astype(f32)                              # (TL, 1)

    if fuse_ds:
        def downsample(v):
            vn = _ln(v, dslnw_ref[...], dslnb_ref[...], eps)
            return (jnp.dot(vn.astype(mxu_dtype), dsw_ref[...],
                            preferred_element_type=f32)
                    + dsb_ref[...].astype(f32))

    # ---- residual / dwconv input: sublane-aligned full-tile store at row `base` ----
    cur = cur_ref[0].astype(f32)                                     # (TL, Cp)
    if fuse_ds:
        res = downsample(cur)                                        # (TL, C)
        if mask_tail:
            res = res * valid
    else:
        res = cur
    xs_ref[base:base + TL, :] = res

    # ---- small halo rows (pad each side; pre-zeroed at sequence edges) ----
    lh = lh_ref[0, 0].astype(f32)                                    # (pad, Cp)
    rh = rh_ref[0, 0].astype(f32)
    if fuse_ds:
        # zero-padding applies to the *downsampled* signal -> gate at the edges.
        lh = downsample(lh) * (j > 0).astype(f32)
        rh = downsample(rh)
        if mask_tail:
            rrows = ((j + 1) * TL
                     + jax.lax.broadcasted_iota(jnp.int32, (pad, 1), 0))
            rh = rh * (rrows < l_valid).astype(f32)
        else:
            rh = rh * (j < nj - 1).astype(f32)
    xs_ref[base - pad:base, :] = lh
    xs_ref[base + TL:base + TL + pad, :] = rh

    # ---- depthwise conv along L: K taps read straight from the scratch ref ----
    acc = jnp.zeros((TL, C), f32) + dwb_ref[...].astype(f32)
    for k in range(K):
        acc = acc + (xs_ref[base - pad + k:base - pad + k + TL, :]
                     * dww_ref[k:k + 1, :].astype(f32))

    # ---- LN -> Linear -> GELU(erf, exact) -> Linear -> gamma -> residual ----
    xn = _ln(acc, lnw_ref[...], lnb_ref[...], eps)
    h = (jnp.dot(xn.astype(mxu_dtype), w1_ref[...], preferred_element_type=f32)
         + b1_ref[...].astype(f32))
    h = 0.5 * h * (1.0 + jax.lax.erf(h * _INV_SQRT2))
    y = (jnp.dot(h.astype(mxu_dtype), w2_ref[...], preferred_element_type=f32)
         + b2_ref[...].astype(f32))
    y = gm_ref[...].astype(f32) * y

    out = xs_ref[base:base + TL, :] + y
    if fuse_final_ln:
        out = _ln(out, flnw_ref[...], flnb_ref[...], eps)
    if mask_tail:
        out = out * valid
    o_ref[...] = out[None].astype(o_ref.dtype)


def stem_kernel(x_ref, w_ref, b_ref, lnw_ref, lnb_ref, o_ref, *,
                eps, mxu_dtype, mask_tail, l_valid):
    """Stem: im2col Conv1d (single contraction-Cin*K matmul) + channels_first LN."""
    f32 = jnp.float32
    TL = x_ref.shape[1]
    acc = (jnp.dot(x_ref[0].astype(mxu_dtype), w_ref[...],
                   preferred_element_type=f32) + b_ref[...].astype(f32))
    out = _ln(acc, lnw_ref[...], lnb_ref[...], eps)
    if mask_tail:
        rows = (pl.program_id(1) * TL
                + jax.lax.broadcasted_iota(jnp.int32, (TL, 1), 0))
        out = out * (rows < l_valid).astype(f32)
    o_ref[...] = out[None].astype(o_ref.dtype)


def downsample_kernel(x_ref, lnw_ref, lnb_ref, w_ref, b_ref, o_ref, *,
                      eps, mxu_dtype, mask_tail, l_valid):
    """Fallback (depth-0 stage): channels_first LN + 1x1 conv (== matmul)."""
    f32 = jnp.float32
    TL = x_ref.shape[1]
    xn = _ln(x_ref[0].astype(f32), lnw_ref[...], lnb_ref[...], eps)
    y = (jnp.dot(xn.astype(mxu_dtype), w_ref[...], preferred_element_type=f32)
         + b_ref[...].astype(f32))
    if mask_tail:
        rows = (pl.program_id(1) * TL
                + jax.lax.broadcasted_iota(jnp.int32, (TL, 1), 0))
        y = y * (rows < l_valid).astype(f32)
    o_ref[...] = y[None].astype(o_ref.dtype)


def final_ln_kernel(x_ref, w_ref, b_ref, o_ref, *, eps):
    """Fallback final channels_first LayerNorm."""
    out = _ln(x_ref[0].astype(jnp.float32), w_ref[...], b_ref[...], eps)
    o_ref[...] = out[None].astype(o_ref.dtype)


# ------------------------------- wrapper helpers -------------------------------


def _wspec(shape):
    n = len(shape)
    return pl.BlockSpec(shape, lambda b, j: (0,) * n)


def _make_halos(h, TL, pad):
    """Tiny (B, nLt, pad, C) left/right halo arrays, zeroed at the sequence edges."""
    B, Lp, C = h.shape
    nLt = Lp // TL
    ht = h.reshape(B, nLt, TL, C)
    zeros = jnp.zeros((B, 1, pad, C), h.dtype)
    left = jnp.concatenate([zeros, ht[:, :-1, TL - pad:, :]], axis=1)
    right = jnp.concatenate([ht[:, 1:, :pad, :], zeros], axis=1)
    return left, right


def _im2col_1d(x, K):
    """x: (B, Lp, Cin) -> (B, Lp, K*Cin) with zero padding (cheap; Cin is tiny)."""
    B, Lp, Cin = x.shape
    pad = (K - 1) // 2
    xp = jnp.pad(x, ((0, 0), (pad, pad), (0, 0)))
    return jnp.concatenate([xp[:, k:k + Lp, :] for k in range(K)], axis=-1)


def _choose_tile_l(L, target=512):
    # 512-row tiles hit ~85% of the HBM roofline vs ~63% at 256 (per-step overhead).
    return min(((L + 7) // 8) * 8, (target // 8) * 8)


# ------------------------------- kernel wrappers -------------------------------


def run_stem(x_col, ds, *, TL, l_valid, eps=_EPS, mxu_dtype=_MXU_DTYPE, out_dtype=None):
    B, Lp, CK = x_col.shape
    C0 = ds["b"].shape[0]
    nLt = Lp // TL
    out_dtype = out_dtype or x_col.dtype
    kernel = functools.partial(stem_kernel, eps=eps, mxu_dtype=mxu_dtype,
                               mask_tail=l_valid < Lp, l_valid=l_valid)
    return pl.pallas_call(
        kernel,
        out_shape=jax.ShapeDtypeStruct((B, Lp, C0), out_dtype),
        grid=(B, nLt),
        in_specs=[pl.BlockSpec((1, TL, CK), lambda b, j: (b, j, 0)),
                  _wspec((CK, C0)), _wspec((1, C0)), _wspec((1, C0)), _wspec((1, C0))],
        out_specs=pl.BlockSpec((1, TL, C0), lambda b, j: (b, j, 0)),
        compiler_params=_CPARAMS,
    )(x_col, ds["w_col"], ds["b"].reshape(1, C0),
      ds["ln_w"].reshape(1, C0), ds["ln_b"].reshape(1, C0))


def run_block(x, blk, *, K, TL, l_valid, ds=None, final_ln=None,
              eps=_EPS, mxu_dtype=_MXU_DTYPE, out_dtype=None):
    B, Lp, Cp = x.shape
    C = blk["dw_w_t"].shape[1]
    H = blk["w1_t"].shape[1]
    nLt = Lp // TL
    pad = (K - 1) // 2
    base = max(8, ((pad + 7) // 8) * 8)            # sublane-aligned row for `cur`
    fuse_ds = ds is not None
    fuse_fln = final_ln is not None
    out_dtype = out_dtype or x.dtype

    lhalo, rhalo = _make_halos(x, TL, pad)

    halo_s = pl.BlockSpec((1, 1, pad, Cp), lambda b, j: (b, j, 0, 0))
    cur_s = pl.BlockSpec((1, TL, Cp), lambda b, j: (b, j, 0))
    out_s = pl.BlockSpec((1, TL, C), lambda b, j: (b, j, 0))

    inputs = [lhalo, x, rhalo]
    in_specs = [halo_s, cur_s, halo_s]
    if fuse_ds:
        inputs += [ds["ln_w"].reshape(1, Cp), ds["ln_b"].reshape(1, Cp),
                   ds["w_t"], ds["b"].reshape(1, C)]
        in_specs += [_wspec((1, Cp)), _wspec((1, Cp)), _wspec((Cp, C)), _wspec((1, C))]
    inputs += [blk["dw_w_t"], blk["dw_b"].reshape(1, C),
               blk["ln_w"].reshape(1, C), blk["ln_b"].reshape(1, C),
               blk["w1_t"], blk["b1"].reshape(1, H),
               blk["w2_t"], blk["b2"].reshape(1, C),
               blk["gamma"].reshape(1, C)]
    in_specs += [_wspec((K, C)), _wspec((1, C)), _wspec((1, C)), _wspec((1, C)),
                 _wspec((C, H)), _wspec((1, H)), _wspec((H, C)), _wspec((1, C)),
                 _wspec((1, C))]
    if fuse_fln:
        fw, fb = final_ln
        inputs += [fw.reshape(1, C), fb.reshape(1, C)]
        in_specs += [_wspec((1, C)), _wspec((1, C))]

    kernel = functools.partial(
        block_kernel, K=K, eps=eps, mxu_dtype=mxu_dtype,
        fuse_ds=fuse_ds, fuse_final_ln=fuse_fln,
        mask_tail=l_valid < Lp, l_valid=l_valid, base=base)

    return pl.pallas_call(
        kernel,
        out_shape=jax.ShapeDtypeStruct((B, Lp, C), out_dtype),
        grid=(B, nLt),
        in_specs=in_specs,
        out_specs=out_s,
        scratch_shapes=[pltpu.VMEM((base + TL + pad, C), jnp.float32)],
        compiler_params=_CPARAMS,
    )(*inputs)


def run_downsample(x, ds, *, TL, l_valid, eps=_EPS, mxu_dtype=_MXU_DTYPE, out_dtype=None):
    B, Lp, Cp = x.shape
    C = ds["b"].shape[0]
    nLt = Lp // TL
    out_dtype = out_dtype or x.dtype
    kernel = functools.partial(downsample_kernel, eps=eps, mxu_dtype=mxu_dtype,
                               mask_tail=l_valid < Lp, l_valid=l_valid)
    return pl.pallas_call(
        kernel,
        out_shape=jax.ShapeDtypeStruct((B, Lp, C), out_dtype),
        grid=(B, nLt),
        in_specs=[pl.BlockSpec((1, TL, Cp), lambda b, j: (b, j, 0)),
                  _wspec((1, Cp)), _wspec((1, Cp)), _wspec((Cp, C)), _wspec((1, C))],
        out_specs=pl.BlockSpec((1, TL, C), lambda b, j: (b, j, 0)),
        compiler_params=_CPARAMS,
    )(x, ds["ln_w"].reshape(1, Cp), ds["ln_b"].reshape(1, Cp),
      ds["w_t"], ds["b"].reshape(1, C))


def run_final_ln(x, w, b, *, TL, eps=_EPS, out_dtype=None):
    B, Lp, C = x.shape
    nLt = Lp // TL
    out_dtype = out_dtype or x.dtype
    return pl.pallas_call(
        functools.partial(final_ln_kernel, eps=eps),
        out_shape=jax.ShapeDtypeStruct((B, Lp, C), out_dtype),
        grid=(B, nLt),
        in_specs=[pl.BlockSpec((1, TL, C), lambda b, j: (b, j, 0)),
                  _wspec((1, C)), _wspec((1, C))],
        out_specs=pl.BlockSpec((1, TL, C), lambda b, j: (b, j, 0)),
        compiler_params=_CPARAMS,
    )(x, w.reshape(1, C), b.reshape(1, C))


# ------------------------------- parameter prep -------------------------------


def _prepare_params(params, mxu_dtype):
    """Transpose / reshape / pre-cast all matmul weights ONCE (host-side)."""
    K = int(params["kernel_size"])
    prep = {"kernel_size": K, "downsample": [], "stages": []}
    for i, ds in enumerate(params["downsample"]):
        if i == 0:
            C0, Cin, _ = ds["conv_w"].shape
            w_col = jnp.transpose(ds["conv_w"], (2, 1, 0)).reshape(K * Cin, C0)
            prep["downsample"].append({"w_col": w_col.astype(mxu_dtype),
                                       "b": ds["conv_b"],
                                       "ln_w": ds["ln_w"], "ln_b": ds["ln_b"]})
        else:
            prep["downsample"].append({"w_t": jnp.transpose(ds["conv_w"][:, :, 0]).astype(mxu_dtype),
                                       "b": ds["conv_b"],
                                       "ln_w": ds["ln_w"], "ln_b": ds["ln_b"]})
    for stage in params["stages"]:
        pstage = []
        for blk in stage:
            pstage.append({"dw_w_t": blk["dw_w"].T,                        # (K, C) f32 (VPU)
                           "dw_b": blk["dw_b"],
                           "ln_w": blk["ln_w"], "ln_b": blk["ln_b"],
                           "w1_t": blk["w1"].T.astype(mxu_dtype),          # (C, H)
                           "b1": blk["b1"],
                           "w2_t": blk["w2"].T.astype(mxu_dtype),          # (H, C)
                           "b2": blk["b2"],
                           "gamma": blk["gamma"]})
        prep["stages"].append(pstage)
    prep["final_ln_w"] = params["final_ln_w"]
    prep["final_ln_b"] = params["final_ln_b"]
    return prep


def _trunc_normal(key, shape, std=0.02):
    # matches torch.nn.init.trunc_normal_(std=0.02) (truncation at +/- 2 std)
    return jax.random.truncated_normal(key, -2.0, 2.0, shape, jnp.float32) * std


def init_encoder_params(key, *, input_channels, depths, dims, kernel_size,
                        layer_scale_init_value=1e-6, mlp_ratio=4.0):
    assert kernel_size % 2 == 1 and kernel_size >= 3
    assert layer_scale_init_value > 0
    params = {"kernel_size": kernel_size, "downsample": [], "stages": []}
    for i in range(len(dims)):
        key, k1 = jax.random.split(key)
        if i == 0:
            ds = {"conv_w": _trunc_normal(k1, (dims[0], input_channels, kernel_size)),
                  "conv_b": jnp.zeros((dims[0],), jnp.float32),
                  "ln_w": jnp.ones((dims[0],), jnp.float32),
                  "ln_b": jnp.zeros((dims[0],), jnp.float32)}
        else:
            ds = {"ln_w": jnp.ones((dims[i - 1],), jnp.float32),
                  "ln_b": jnp.zeros((dims[i - 1],), jnp.float32),
                  "conv_w": _trunc_normal(k1, (dims[i], dims[i - 1], 1)),
                  "conv_b": jnp.zeros((dims[i],), jnp.float32)}
        params["downsample"].append(ds)

        stage = []
        C = dims[i]
        H = int(mlp_ratio * C)
        for _ in range(depths[i]):
            key, kd, ka, kb = jax.random.split(key, 4)
            stage.append({"dw_w": _trunc_normal(kd, (C, kernel_size)),  # torch (C,1,K) squeezed
                          "dw_b": jnp.zeros((C,), jnp.float32),
                          "ln_w": jnp.ones((C,), jnp.float32),
                          "ln_b": jnp.zeros((C,), jnp.float32),
                          "w1": _trunc_normal(ka, (H, C)),              # torch Linear (out, in)
                          "b1": jnp.zeros((H,), jnp.float32),
                          "w2": _trunc_normal(kb, (C, H)),
                          "b2": jnp.zeros((C,), jnp.float32),
                          "gamma": layer_scale_init_value * jnp.ones((C,), jnp.float32)})
        params["stages"].append(stage)

    params["final_ln_w"] = jnp.ones((dims[-1],), jnp.float32)
    params["final_ln_b"] = jnp.zeros((dims[-1],), jnp.float32)
    return params


# --------------------------------- forward pass --------------------------------


def encoder_forward(params, x, *, tile_l=None, mxu_dtype=_MXU_DTYPE,
                    act_dtype=None, eps=_EPS):
    """x: (B, Cin, L) channels-first (PyTorch layout). Returns (B, dims[-1], L)."""
    K = int(params["kernel_size"])
    assert K % 2 == 1 and K >= 3, "Pallas path expects odd kernel_size >= 3"
    pad = (K - 1) // 2
    prep = _prepare_params(params, mxu_dtype)
    B, Cin, L = x.shape
    act_dtype = act_dtype or x.dtype

    h = jnp.transpose(x, (0, 2, 1))                     # channels-last (B, L, Cin)
    TL = int(tile_l) if tile_l is not None else _choose_tile_l(L)
    TL = max(8, (TL // 8) * 8)
    TL = min(TL, ((L + 7) // 8) * 8)
    TL = max(TL, ((pad + 7) // 8) * 8)
    Lp = ((L + TL - 1) // TL) * TL
    if Lp != L:                                         # pad once; kernels mask the tail
        h = jnp.pad(h, ((0, 0), (0, Lp - L), (0, 0)))

    # Stem: im2col in the wrapper + one fused matmul/LN kernel.
    x_col = _im2col_1d(h, K)
    h = run_stem(x_col, prep["downsample"][0], TL=TL, l_valid=L, eps=eps,
                 mxu_dtype=mxu_dtype, out_dtype=act_dtype)

    nstages = len(prep["stages"])
    for i in range(nstages):
        stage = prep["stages"][i]
        ds = prep["downsample"][i] if i > 0 else None
        if ds is not None and len(stage) == 0:          # fallback: depth-0 stage
            h = run_downsample(h, ds, TL=TL, l_valid=L, eps=eps,
                               mxu_dtype=mxu_dtype, out_dtype=act_dtype)
            ds = None
        for bi, blk in enumerate(stage):
            is_last = (i == nstages - 1) and (bi == len(stage) - 1)
            fln = (prep["final_ln_w"], prep["final_ln_b"]) if is_last else None
            h = run_block(h, blk, K=K, TL=TL, l_valid=L,
                          ds=ds if bi == 0 else None, final_ln=fln,
                          eps=eps, mxu_dtype=mxu_dtype, out_dtype=act_dtype)
    if len(prep["stages"][-1]) == 0:                    # fallback: final LN not yet fused
        h = run_final_ln(h, prep["final_ln_w"], prep["final_ln_b"], TL=TL, eps=eps)

    if Lp != L:
        h = h[:, :L, :]
    return jnp.transpose(h, (0, 2, 1)).astype(x.dtype)


# -------------------------- pure-JAX reference (check) --------------------------


_HI = jax.lax.Precision.HIGHEST


def _conv1d_ref(h, w, b, pad):
    K = w.shape[-1]
    L = h.shape[-1]
    hp = jnp.pad(h, ((0, 0), (0, 0), (pad, pad)))
    out = jnp.zeros((h.shape[0], w.shape[0], L), jnp.float32)
    for k in range(K):
        out = out + jnp.einsum("oi,bil->bol", w[:, :, k], hp[:, :, k:k + L], precision=_HI)
    return out + b[None, :, None]


def _dwconv_ref(h, w, b, pad):
    K = w.shape[-1]
    L = h.shape[-1]
    hp = jnp.pad(h, ((0, 0), (0, 0), (pad, pad)))
    out = jnp.zeros_like(h)
    for k in range(K):
        out = out + hp[:, :, k:k + L] * w[None, :, k:k + 1]
    return out + b[None, :, None]


def encoder_reference(params, x):
    K = params["kernel_size"]

    def ln_cf(h, w, b):
        u = jnp.mean(h, axis=1, keepdims=True)
        s = jnp.mean((h - u) ** 2, axis=1, keepdims=True)
        hn = (h - u) / jnp.sqrt(s + _EPS)
        return w[None, :, None] * hn + b[None, :, None]

    h = x
    for i, stage in enumerate(params["stages"]):
        ds = params["downsample"][i]
        if i == 0:
            h = _conv1d_ref(h, ds["conv_w"], ds["conv_b"], K // 2)
            h = ln_cf(h, ds["ln_w"], ds["ln_b"])
        else:
            h = ln_cf(h, ds["ln_w"], ds["ln_b"])
            h = _conv1d_ref(h, ds["conv_w"], ds["conv_b"], 0)
        for blk in stage:
            inp = h
            hd = _dwconv_ref(h, blk["dw_w"], blk["dw_b"], (K - 1) // 2)
            ht = jnp.transpose(hd, (0, 2, 1))
            u = jnp.mean(ht, axis=-1, keepdims=True)
            s = jnp.mean((ht - u) ** 2, axis=-1, keepdims=True)
            hn = (ht - u) / jnp.sqrt(s + _EPS) * blk["ln_w"] + blk["ln_b"]
            hh = jnp.dot(hn, blk["w1"].T, precision=_HI) + blk["b1"]
            hh = 0.5 * hh * (1.0 + jax.lax.erf(hh * _INV_SQRT2))
            yy = (jnp.dot(hh, blk["w2"].T, precision=_HI) + blk["b2"]) * blk["gamma"]
            h = inp + jnp.transpose(yy, (0, 2, 1))
    return ln_cf(h, params["final_ln_w"], params["final_ln_b"])


# ------------------------------------- main -------------------------------------

if __name__ == "__main__":
    B, Cin = 2, 4
    depths = [1, 1]
    dims = [8, 16]
    K = 7

    key = jax.random.PRNGKey(0)
    kp, kx1, kx2 = jax.random.split(key, 3)
    params = init_encoder_params(kp, input_channels=Cin, depths=depths, dims=dims,
                                 kernel_size=K, layer_scale_init_value=0.1)

    # --- Test 1: f32 MXU, 2 L-tiles per batch (exercises halo exchange + fused
    #             downsample + fused final LN).
    L1 = 16
    x1 = jax.random.normal(kx1, (B, Cin, L1), jnp.float32)
    y1 = jax.block_until_ready(encoder_forward(params, x1, tile_l=8,
                                               mxu_dtype=jnp.float32))
    r1 = encoder_reference(params, x1)
    assert y1.shape == (B, dims[-1], L1), y1.shape
    assert bool(jnp.all(jnp.isfinite(y1)))
    e1 = float(jnp.max(jnp.abs(y1 - r1)))
    assert e1 < 1e-4, f"f32 mismatch vs reference: {e1}"

    # --- Test 2: f32 MXU, ragged L (exercises boundary padding + in-kernel tail mask).
    L2 = 18
    x2 = jax.random.normal(kx2, (B, Cin, L2), jnp.float32)
    y2 = jax.block_until_ready(encoder_forward(params, x2, tile_l=8,
                                               mxu_dtype=jnp.float32))
    r2 = encoder_reference(params, x2)
    assert y2.shape == (B, dims[-1], L2), y2.shape
    e2 = float(jnp.max(jnp.abs(y2 - r2)))
    assert e2 < 1e-4, f"ragged-L mismatch vs reference: {e2}"

    # --- Test 3: default bf16 MXU operands + bf16 inter-block activations.
    y3 = jax.block_until_ready(encoder_forward(params, x1, tile_l=8,
                                               act_dtype=jnp.bfloat16))
    assert bool(jnp.all(jnp.isfinite(y3)))
    e3 = float(jnp.max(jnp.abs(y3 - r1)) / (jnp.max(jnp.abs(r1)) + 1e-6))
    assert e3 < 7.5e-2, f"bf16 mismatch vs reference (normalized): {e3}"

    print("KERNEL_OK")
</pallas_src>

<mosaic_0001>
module attributes {stable_mosaic.version = 11 : i64} {
  func.func @stem_kernel(%arg0: i32, %arg1: i32, %arg2: memref<1x8x28xf32, #tpu.memory_space<vmem>>, %arg3: memref<28x8xf32, #tpu.memory_space<vmem>>, %arg4: memref<1x8xf32, #tpu.memory_space<vmem>>, %arg5: memref<1x8xf32, #tpu.memory_space<vmem>>, %arg6: memref<1x8xf32, #tpu.memory_space<vmem>>, %arg7: memref<1x8x8xf32, #tpu.memory_space<vmem>>) attributes {dimension_semantics = [#tpu.dimension_semantics<parallel>, #tpu.dimension_semantics<parallel>], iteration_bounds = array<i64: 2, 2>, scalar_prefetch = 0 : i64, scratch_operands = 0 : i64, tpu.core_type = #tpu.core_type<tc>, window_params = [{transform_indices = @transform_0, window_bounds = array<i64: 1, 8, 28>}, {pipeline_mode = #tpu.pipeline_mode<synchronous>, transform_indices = @transform_1, window_bounds = array<i64: 28, 8>}, {pipeline_mode = #tpu.pipeline_mode<synchronous>, transform_indices = @transform_2, window_bounds = array<i64: 1, 8>}, {pipeline_mode = #tpu.pipeline_mode<synchronous>, transform_indices = @transform_3, window_bounds = array<i64: 1, 8>}, {pipeline_mode = #tpu.pipeline_mode<synchronous>, transform_indices = @transform_4, window_bounds = array<i64: 1, 8>}, {transform_indices = @transform_5, window_bounds = array<i64: 1, 8, 8>}]} {
    %c0 = arith.constant 0 : index
    %c0_0 = arith.constant 0 : index
    %c0_1 = arith.constant 0 : index
    %0 = vector.load %arg2[%c0, %c0_0, %c0_1] : memref<1x8x28xf32, #tpu.memory_space<vmem>>, vector<1x8x28xf32>
    %1 = vector.shape_cast %0 : vector<1x8x28xf32> to vector<8x28xf32>
    %c0_2 = arith.constant 0 : index
    %c0_3 = arith.constant 0 : index
    %2 = vector.load %arg3[%c0_2, %c0_3] : memref<28x8xf32, #tpu.memory_space<vmem>>, vector<28x8xf32>
    %cst = arith.constant dense<0.000000e+00> : vector<8x8xf32>
    %3 = tpu.matmul %1, %2, %cst {dimension_numbers = #tpu.dot_dimension_numbers<[1], [0], [0], [1], [0, 0, 1, 1], [], []>} : vector<8x28xf32>, vector<28x8xf32>, vector<8x8xf32> -> vector<8x8xf32>
    %c0_4 = arith.constant 0 : index
    %c0_5 = arith.constant 0 : index
    %4 = vector.load %arg4[%c0_4, %c0_5] : memref<1x8xf32, #tpu.memory_space<vmem>>, vector<1x8xf32>
    %5 = vector.broadcast %4 : vector<1x8xf32> to vector<8x8xf32>
    %6 = arith.addf %3, %5 : vector<8x8xf32>
    %c0_6 = arith.constant 0 : index
    %c0_7 = arith.constant 0 : index
    %7 = vector.load %arg5[%c0_6, %c0_7] : memref<1x8xf32, #tpu.memory_space<vmem>>, vector<1x8xf32>
    %c0_8 = arith.constant 0 : index
    %c0_9 = arith.constant 0 : index
    %8 = vector.load %arg6[%c0_8, %c0_9] : memref<1x8xf32, #tpu.memory_space<vmem>>, vector<1x8xf32>
    %cst_10 = arith.constant dense<0.000000e+00> : vector<8xf32>
    %9 = vector.multi_reduction <add>, %6, %cst_10 [1] : vector<8x8xf32> to vector<8xf32>
    %10 = vector.shape_cast %9 : vector<8xf32> to vector<8x1xf32>
    %cst_11 = arith.constant 8.000000e+00 : f32
    %11 = vector.broadcast %cst_11 : f32 to vector<8x1xf32>
    %12 = arith.divf %10, %11 : vector<8x1xf32>
    %13 = vector.broadcast %12 : vector<8x1xf32> to vector<8x8xf32>
    %14 = arith.subf %6, %13 : vector<8x8xf32>
    %15 = arith.mulf %14, %14 : vector<8x8xf32>
    %cst_12 = arith.constant dense<0.000000e+00> : vector<8xf32>
    %16 = vector.multi_reduction <add>, %15, %cst_12 [1] : vector<8x8xf32> to vector<8xf32>
    %17 = vector.shape_cast %16 : vector<8xf32> to vector<8x1xf32>
    %cst_13 = arith.constant 8.000000e+00 : f32
    %18 = vector.broadcast %cst_13 : f32 to vector<8x1xf32>
    %19 = arith.divf %17, %18 : vector<8x1xf32>
    %20 = vector.broadcast %12 : vector<8x1xf32> to vector<8x8xf32>
    %21 = arith.subf %6, %20 : vector<8x8xf32>
    %cst_14 = arith.constant 9.99999997E-7 : f32
    %22 = vector.broadcast %cst_14 : f32 to vector<8x1xf32>
    %23 = arith.addf %19, %22 : vector<8x1xf32>
    %24 = math.rsqrt %23 : vector<8x1xf32>
    %25 = vector.broadcast %24 : vector<8x1xf32> to vector<8x8xf32>
    %26 = arith.mulf %21, %25 : vector<8x8xf32>
    %27 = vector.broadcast %7 : vector<1x8xf32> to vector<8x8xf32>
    %28 = arith.mulf %26, %27 : vector<8x8xf32>
    %29 = vector.broadcast %8 : vector<1x8xf32> to vector<8x8xf32>
    %30 = arith.addf %28, %29 : vector<8x8xf32>
    %31 = vector.shape_cast %30 : vector<8x8xf32> to vector<1x8x8xf32>
    %c0_15 = arith.constant 0 : index
    %c0_16 = arith.constant 0 : index
    %c0_17 = arith.constant 0 : index
    %32 = vector.load %arg7[%c0_15, %c0_16, %c0_17] : memref<1x8x8xf32, #tpu.memory_space<vmem>>, vector<1x8x8xf32>
    tpu.vector_store %arg7[%c0_15, %c0_16, %c0_17], %31 {strides = array<i32>} : memref<1x8x8xf32, #tpu.memory_space<vmem>>, vector<1x8x8xf32>,
    return
  }
  func.func @transform_0(%arg0: i32, %arg1: i32) -> (i32, i32, i32) {
    %c0_i32 = arith.constant 0 : i32
    %c0_i32_0 = arith.constant 0 : i32
    return %arg0, %arg1, %c0_i32 : i32, i32, i32
  }
  func.func @transform_1(%arg0: i32, %arg1: i32) -> (i32, i32) {
    %c0_i32 = arith.constant 0 : i32
    %c0_i32_0 = arith.constant 0 : i32
    %c0_i32_1 = arith.constant 0 : i32
    return %c0_i32, %c0_i32_0 : i32, i32
  }
  func.func @transform_2(%arg0: i32, %arg1: i32) -> (i32, i32) {
    %c0_i32 = arith.constant 0 : i32
    %c0_i32_0 = arith.constant 0 : i32
    %c0_i32_1 = arith.constant 0 : i32
    return %c0_i32, %c0_i32_0 : i32, i32
  }
  func.func @transform_3(%arg0: i32, %arg1: i32) -> (i32, i32) {
    %c0_i32 = arith.constant 0 : i32
    %c0_i32_0 = arith.constant 0 : i32
    %c0_i32_1 = arith.constant 0 : i32
    return %c0_i32, %c0_i32_0 : i32, i32
  }
  func.func @transform_4(%arg0: i32, %arg1: i32) -> (i32, i32) {
    %c0_i32 = arith.constant 0 : i32
    %c0_i32_0 = arith.constant 0 : i32
    %c0_i32_1 = arith.constant 0 : i32
    return %c0_i32, %c0_i32_0 : i32, i32
  }
  func.func @transform_5(%arg0: i32, %arg1: i32) -> (i32, i32, i32) {
    %c0_i32 = arith.constant 0 : i32
    %c0_i32_0 = arith.constant 0 : i32
    return %arg0, %arg1, %c0_i32 : i32, i32, i32
  }
}

</mosaic_0001>

<bundles_post_ra>
// kernel: tpu_custom_call.1
= control target key start
LH: loop header
LB: loop body
LE: loop exit
PB: predicated region body
PF: predicated region fallthrough
CT: control target
= control target key end

     0   :  { %s623_s18 = smov 0   ;;  %s625_s19 = smov 0   ;;  %s710_s0 = inlined_call_operand.vmem [shape: f32[2,16,28], index: 0, kind: input, shape index: {}]   ;;  %s711_s1 = inlined_call_operand.vmem [shape: f32[28,8], index: 1, kind: input, shape index: {}]   ;;  %s712_s2 = inlined_call_operand.vmem [shape: f32[1,8], index: 2, kind: input, shape index: {}]   ;;  %s713_s3 = inlined_call_operand.vmem [shape: f32[1,8], index: 3, kind: input, shape index: {}]   ;;  %s714_s4 = inlined_call_operand.vmem [shape: f32[1,8], index: 4, kind: input, shape index: {}]   ;;  %s715_s5 = inlined_call_operand.vmem [shape: f32[2,16,8], index: 5, kind: output, shape index: {}]  }
   0x1   :  { %s627_s20 = smov 0   ;;  %s629_s21 = smov 0  }
   0x2   :  { %s631_s22 = smov 0  }
   0x3 LB: > { %s24_s23 = sadd.s32 1, %s579_s20  ;;  %s27_s24 = sadd.s32 1, %s583_s21  ;;  %s587_s22 = sphi %s631_s22, %s15_s22   ;;  %s583_s21 = sphi %s629_s21, %s719_s21   ;;  %s579_s20 = sphi %s627_s20, %s718_s20   ;;  %s575_s19 = sphi %s625_s19, %s717_s19   ;;  %s571_s18 = sphi %s623_s18, %s716_s18  }
   0x4   : > { %p25_p0 = scmp.ge.s32.totalorder %s24_s23, 2  ;;  %p468_p1 = scmp.ge.s32.totalorder %s587_s22, 1 }
   0x5   : > { %p206_p2 = scmp.lt.s32.totalorder %s587_s22, 5 }
   0x6   : > { %s721_s23 = smov (%p25_p0, %s24_s23), 0  ;;  %s723_s24 = smov (!%p25_p0, %s27_s24), %s583_s21 }
   0x7   : > { %p207_p3 = pnand %p468_p1, %p206_p2  ;;  %p29_p4 = scmp.ge.s32.totalorder %s723_s24, 2 }
   0x8   : > { %v257_v0 = vld [vmem:[%s711_s1] sm:$0xff] (!%p207_p3)  ;;  %v258_v1 = vld [vmem:[%s711_s1 + $0x8] sm:$0xff] (!%p207_p3)  ;;  %v259_v2 = vld [vmem:[%s711_s1 + $0x10] sm:$0xff] (!%p207_p3)  ;;  %vm272_vm0 = vcmask (!%p207_p3), 1043456   ;;  %v589_v3 = vmov (!%p207_p3), 0.0|0.0   ;;  %p240_p5 = scmp.lt.s32.totalorder (!%p207_p3), %s575_s19, 1 }
   0x9   : > { %s725_s24 = smov (%p29_p4, %s723_s24), 0  ;;  %210 = sbr.rel (%p207_p3) target bundleno = 550 (0x226), region = 40 }
   0xa   : > { %496 = vmatprep.subr.bf16.mxu0 (!%p207_p3), %v589_v3  ;;  %v497_v4 = vpack.c.bf16 (!%p207_p3), %v258_v1, %v257_v0  ;;  %v260_v5 = vld [vmem:[%s711_s1 + $0x18] sm:$0xf] (!%p207_p3)  ;;  %p242_p6 = scmp.lt.s32.totalorder (!%p207_p3), %s571_s18, 1  ;;  %vm590_vm1 = vmmov (!%p207_p3), 0   ;;  %v591_v6 = vmov (!%p207_p3), 0.0   ;;  %vm592_vm2 = vmmov (!%p207_p3), 1  }
   0xb   : > { %493 = vmatprep.mubr.msk.f32.mxu0 (!%p207_p3), %vm590_vm1, %v591_v6  ;;  %v500_v7 = vpack.c.bf16 (!%p207_p3), %v260_v5, %v259_v2  ;;  %vm501_vm3 = vmpackc.low (!%p207_p3), %vm272_vm0, %vm592_vm2  ;;  %vm268_vm4 = vcmask (!%p207_p3), 228352   ;;  %v473_v9 = vld [vmem:[%s712_s2] ss:$0 sm:$0xff] (!%p207_p3)  ;;  %vm348_vm5 = vcmask (!%p207_p3), 64512  }
   0xc   : > { %498 = vmatpush3.bf16.msra.mxu0 (!%p207_p3), %v497_v4  ;;  %v476_v23 = vld [vmem:[%s713_s3] ss:$0 sm:$0xff] (!%p207_p3) }
   0xd   : > { %499 = vmatprep.subr.bf16.mxu0 (!%p207_p3), %v589_v3  ;;  %v477_v25 = vld [vmem:[%s714_s4] ss:$0 sm:$0xff] (!%p207_p3) }
  0x10   : > { %s727_s19 = smov (!%p240_p5, %s575_s19), 1  ;;  %s729_s18 = smov (!%p242_p6, %s571_s18), 1  ;;  %502 = vmatpush3.bf16.msk.msra.mxu0 %vm501_vm3, %v500_v7 }
  0x11   : > { %s469_s8 = sshll.u32 %s727_s19, 1 }
  0x12   : > { %s674_s9 = sadd.s32 %s469_s8, %s729_s18 }
  0x13   : > { %s470_s10 = sshll.u32 %s674_s9, 3 }
  0x14   : > { %s247_s13 = scalar_lea.vmem %s710_s0, %s470_s10  ;;  %s255_s27 = scalar_lea.vmem %s715_s5, %s470_s10 }
  0x15   : > { %v256_v8 = vld [vmem:[%s247_s13] sm:$0xff] }
  0x16   : > { %494 = vmatmul.mubr.msk.f32.vlgmr.msra.gmra.mrb[0].mxu0 %vm268_vm4, %v256_v8 }
  0xe9   : > { %v342_v10 = vpop.f32.mrb[0].mxu0 }
  0xea   : > { %v343_v11 = vadd.f32 %v473_v9, %v342_v10  ;;  %v495_v12 = vpop.f32.mrb[1].mxu0 }
  0xec   : > { %v349_v13 = vsel %vm348_vm5, %v343_v11, 0.0 }
  0xed   : > { %350 = vadd.xlane.f32.xlu0 %v349_v13 }
 0x17a   : > { %v351_v14 = vpop.xlane.xlu0 %350 }
 0x17b   : > { %v353_v15 = vmul.f32 0.125, %v351_v14 }
 0x17d   : > { %v354_v16 = vsub.f32 %v343_v11, %v353_v15 }
 0x17f   : > { %v355_v17 = vmul.f32 %v354_v16, %v354_v16 }
 0x181   : > { %v356_v18 = vsel %vm348_vm5, %v355_v17, 0.0 }
 0x182   : > { %357 = vadd.xlane.f32.xlu0 %v356_v18 }
 0x20f   : > { %v358_v19 = vpop.xlane.xlu0 %357 }
 0x210   : > { %v359_v20 = vmul.f32 0.125, %v358_v19 }
 0x212   : > { %v360_v21 = vadd.f32 1e-06, %v359_v20 }
 0x214   : > { %547 = vrsqrt.f32 %v360_v21 }
 0x21e   : > { %v548_v22 = vpop.eup %547 }
 0x21f   : > { %v362_v24 = vmul.f32 %v548_v22, %v354_v16 }
 0x221   : > { %v369_v26 = vmul.f32 %v476_v23, %v362_v24 }
 0x223   : > { %v376_v27 = vadd.f32 %v477_v25, %v369_v26 }
 0x225   : > { %377 = vst.msk [vmem:[%s255_s27] sm:$0xff] %vm348_vm5, %v376_v27 }
 0x226 PF: > { %s15_s22 = sadd.s32 1, %s587_s22   ;;  %s716_s18 = smov %s579_s20 }
 0x227   : > { %p12_p7 = scmp.ge.s32.totalorder %s15_s22, 6   ;;  %s717_s19 = smov %s583_s21 }
 0x228   : > { %s718_s20 = smov %s721_s23  ;;  %s719_s21 = smov %s725_s24 }
 0x229   :  { %14 = sbr.rel (!%p12_p7) target bundleno = 3 (0x3), region = 70 }

</bundles_post_ra>
